<compile_context>
chip_gen: v7x
topology: tpu7x:2x2x1
jax: 0.10.0
libtpu: 0.0.40
codegen_flags: <defaults>
</compile_context>

<pallas_src>
import jax
import jax.numpy as jnp
from jax.experimental import pallas as pl
from jax.experimental.pallas import tpu as pltpu


def _down_kernel(x_ref, lh_ref, rh_ref, w_ref, b_ref, p_ref, o_ref):
    # x_ref : (1, Cin, TL)      activation tile, length in lanes (native NCL)
    # lh_ref: (1, 1, Cin, 1)    column just left of this tile (zeros at sequence start)
    # rh_ref: (1, 1, Cin, 1)    column just right of this tile (zeros at sequence end)
    # w_ref : (Cout, 3*Cin)     fused conv taps (bf16), w[co, k*Cin+ci] = W[co, ci, k]
    # b_ref : (Cout, 1)         bias (f32)
    # p_ref : (TL, TL//2)       avg-pool matrix: 0.5 at (2j, j) and (2j+1, j) (f32)
    # o_ref : (1, Cout, TL//2)  pooled output tile
    x = x_ref[0]                               # (Cin, TL) f32
    lh = lh_ref[0, 0]                          # (Cin, 1)
    rh = rh_ref[0, 0]                          # (Cin, 1)
    tl = x.shape[1]

    # +-1 shifted copies with the halo column inserted; lane-local shifts only.
    x_m1 = jnp.concatenate([lh, x[:, :tl - 1]], axis=1)   # x[l-1]  (conv tap k=0)
    x_p1 = jnp.concatenate([x[:, 1:], rh], axis=1)        # x[l+1]  (conv tap k=2)

    # im2col: one K=3*Cin matmul instead of three K=Cin matmuls (fills the MXU
    # contraction dim); bf16 inputs, f32 accumulation.
    im2col = jnp.concatenate([x_m1, x, x_p1], axis=0).astype(jnp.bfloat16)   # (3Cin, TL)

    y = jnp.dot(w_ref[...], im2col, preferred_element_type=jnp.float32)      # (Cout, TL)
    y = y + b_ref[...]                          # bias broadcasts over lanes
    y = jnp.where(y > 0, y, 0.2 * y)            # LeakyReLU(0.2), f32

    # AvgPool1d(kernel=2, stride=2) along lanes via a constant selection matmul
    # (avoids strided lane gathers; exact 0.5 weights, f32).
    o = jnp.dot(y, p_ref[...], preferred_element_type=jnp.float32)           # (Cout, TL//2)
    o_ref[0] = o.astype(o_ref.dtype)


@jax.jit
def down_forward(x_ncl, weight, bias):
    """x_ncl: (N, Cin, L) float32; weight: (Cout, Cin, 3); bias: (Cout,).
    Returns (N, Cout, L//2) — identical layout/semantics to the PyTorch module."""
    N, Cin, L = x_ncl.shape
    Cout = weight.shape[0]
    assert L % 2 == 0, "AvgPool1d(2,2) needs even length"

    # Length tile: prefer a multiple of 256 so the pooled output tile is a
    # multiple of 128 lanes; otherwise fall back to the full (small) length.
    TL = L
    for cand in (1024, 512, 256):
        if L % cand == 0:
            TL = cand
            break
    nt = L // TL
    Lo_t = TL // 2

    # Fused conv taps: w_f[co, k*Cin + ci] = weight[co, ci, k]; bf16 for the MXU.
    w_f = jnp.transpose(weight, (0, 2, 1)).reshape(Cout, 3 * Cin).astype(jnp.bfloat16)
    b_2d = bias.reshape(Cout, 1).astype(jnp.float32)

    # Per-tile halo columns (tiny: 2 columns per L-tile; zeros at sequence ends
    # implement the conv's padding=1).
    zcol = jnp.zeros((N, Cin, 1), x_ncl.dtype)
    lh = jnp.concatenate([zcol, x_ncl[:, :, TL - 1:L - 1:TL]], axis=2)   # (N, Cin, nt)
    rh = jnp.concatenate([x_ncl[:, :, TL:L:TL], zcol], axis=2)           # (N, Cin, nt)
    lh = jnp.transpose(lh, (0, 2, 1))[..., None]                         # (N, nt, Cin, 1)
    rh = jnp.transpose(rh, (0, 2, 1))[..., None]                         # (N, nt, Cin, 1)

    # AvgPool(2,2) as a matmul: P[2j, j] = P[2j+1, j] = 0.5.
    pool = (jnp.arange(TL)[:, None] // 2 ==
            jnp.arange(Lo_t)[None, :]).astype(jnp.float32) * 0.5          # (TL, TL//2)

    out = pl.pallas_call(
        _down_kernel,
        out_shape=jax.ShapeDtypeStruct((N, Cout, L // 2), x_ncl.dtype),
        grid_spec=pltpu.PrefetchScalarGridSpec(
            num_scalar_prefetch=0,
            grid=(N, nt),
            in_specs=[
                pl.BlockSpec((1, Cin, TL), lambda n, t: (n, 0, t)),        # x tile (native NCL)
                pl.BlockSpec((1, 1, Cin, 1), lambda n, t: (n, t, 0, 0)),   # left halo column
                pl.BlockSpec((1, 1, Cin, 1), lambda n, t: (n, t, 0, 0)),   # right halo column
                pl.BlockSpec((Cout, 3 * Cin), lambda n, t: (0, 0)),        # fused weights (bf16)
                pl.BlockSpec((Cout, 1), lambda n, t: (0, 0)),              # bias
                pl.BlockSpec((TL, Lo_t), lambda n, t: (0, 0)),             # pooling matrix
            ],
            out_specs=pl.BlockSpec((1, Cout, Lo_t), lambda n, t: (n, 0, t)),
        ),
        compiler_params=pltpu.CompilerParams(
            dimension_semantics=("parallel", "parallel"),
            vmem_limit_bytes=32 * 1024 * 1024,
        ),
    )(x_ncl, lh, rh, w_f, b_2d, pool)
    return out


def _reference(x_ncl, weight, bias):
    # Pure-JAX reference of the PyTorch forward for verification.
    y = jax.lax.conv_general_dilated(
        x_ncl, weight, window_strides=(1,), padding=((1, 1),),
        dimension_numbers=("NCH", "OIH", "NCH"))
    y = y + bias[None, :, None]
    y = jnp.where(y > 0, y, 0.2 * y)
    N, C, L = y.shape
    return y.reshape(N, C, L // 2, 2).mean(axis=-1)


def _run_case(key, N, Cin, Cout, L):
    kx, kw, kb = jax.random.split(key, 3)
    x = jax.random.normal(kx, (N, Cin, L), dtype=jnp.float32)
    # Deterministic, PyTorch-like uniform init: U(-s, s), s = 1/sqrt(Cin*k)
    s = 1.0 / jnp.sqrt(jnp.float32(Cin * 3))
    weight = jax.random.uniform(kw, (Cout, Cin, 3), jnp.float32, -s, s)
    bias = jax.random.uniform(kb, (Cout,), jnp.float32, -s, s)

    out = down_forward(x, weight, bias)
    out = jax.block_until_ready(out)

    ref = _reference(x, weight, bias)
    assert out.shape == (N, Cout, L // 2)
    # bf16 matmul inputs -> loosened tolerance vs. the f32 reference.
    assert jnp.allclose(out, ref, atol=1e-2, rtol=1e-2), \
        float(jnp.max(jnp.abs(out - ref)))


if __name__ == "__main__":
    key = jax.random.PRNGKey(0)
    k1, k2 = jax.random.split(key, 2)

    # Small shape matching the module spec (single L tile).
    _run_case(k1, N=2, Cin=4, Cout=8, L=16)
    # Slightly longer sequence exercising the tiled-L + halo path (nt = 2).
    _run_case(k2, N=1, Cin=8, Cout=16, L=512)

    print("KERNEL_OK")
</pallas_src>

<mosaic_0001>
module attributes {stable_mosaic.version = 11 : i64} {
  func.func @_down_kernel(%arg0: i32, %arg1: i32, %arg2: memref<1x4x16xf32, #tpu.memory_space<vmem>>, %arg3: memref<1x1x4x1xf32, #tpu.memory_space<vmem>>, %arg4: memref<1x1x4x1xf32, #tpu.memory_space<vmem>>, %arg5: memref<8x12xbf16, #tpu.memory_space<vmem>>, %arg6: memref<8x1xf32, #tpu.memory_space<vmem>>, %arg7: memref<16x8xf32, #tpu.memory_space<vmem>>, %arg8: memref<1x8x8xf32, #tpu.memory_space<vmem>>) attributes {dimension_semantics = [#tpu.dimension_semantics<parallel>, #tpu.dimension_semantics<parallel>], iteration_bounds = array<i64: 2, 1>, scalar_prefetch = 0 : i64, scratch_operands = 0 : i64, tpu.core_type = #tpu.core_type<tc>, window_params = [{transform_indices = @transform_0, window_bounds = array<i64: 1, 4, 16>}, {transform_indices = @transform_1, window_bounds = array<i64: 1, 1, 4, 1>}, {transform_indices = @transform_2, window_bounds = array<i64: 1, 1, 4, 1>}, {pipeline_mode = #tpu.pipeline_mode<synchronous>, transform_indices = @transform_3, window_bounds = array<i64: 8, 12>}, {pipeline_mode = #tpu.pipeline_mode<synchronous>, transform_indices = @transform_4, window_bounds = array<i64: 8, 1>}, {pipeline_mode = #tpu.pipeline_mode<synchronous>, transform_indices = @transform_5, window_bounds = array<i64: 16, 8>}, {transform_indices = @transform_6, window_bounds = array<i64: 1, 8, 8>}]} {
    %c0 = arith.constant 0 : index
    %c0_0 = arith.constant 0 : index
    %c0_1 = arith.constant 0 : index
    %0 = vector.load %arg2[%c0, %c0_0, %c0_1] : memref<1x4x16xf32, #tpu.memory_space<vmem>>, vector<1x4x16xf32>
    %1 = vector.shape_cast %0 : vector<1x4x16xf32> to vector<4x16xf32>
    %c0_2 = arith.constant 0 : index
    %c0_3 = arith.constant 0 : index
    %c0_4 = arith.constant 0 : index
    %c0_5 = arith.constant 0 : index
    %2 = vector.load %arg3[%c0_2, %c0_3, %c0_4, %c0_5] : memref<1x1x4x1xf32, #tpu.memory_space<vmem>>, vector<1x1x4x1xf32>
    %3 = vector.shape_cast %2 : vector<1x1x4x1xf32> to vector<4x1xf32>
    %c0_6 = arith.constant 0 : index
    %c0_7 = arith.constant 0 : index
    %c0_8 = arith.constant 0 : index
    %c0_9 = arith.constant 0 : index
    %4 = vector.load %arg4[%c0_6, %c0_7, %c0_8, %c0_9] : memref<1x1x4x1xf32, #tpu.memory_space<vmem>>, vector<1x1x4x1xf32>
    %5 = vector.shape_cast %4 : vector<1x1x4x1xf32> to vector<4x1xf32>
    %6 = vector.extract_strided_slice %1 {offsets = [0, 0], sizes = [4, 15], strides = [1, 1]} : vector<4x16xf32> to vector<4x15xf32>
    %7 = tpu.concatenate %3, %6 in 1 : vector<4x1xf32>, vector<4x15xf32> -> vector<4x16xf32>
    %8 = vector.extract_strided_slice %1 {offsets = [0, 1], sizes = [4, 15], strides = [1, 1]} : vector<4x16xf32> to vector<4x15xf32>
    %9 = tpu.concatenate %8, %5 in 1 : vector<4x15xf32>, vector<4x1xf32> -> vector<4x16xf32>
    %10 = tpu.concatenate %7, %1, %9 in 0 : vector<4x16xf32>, vector<4x16xf32>, vector<4x16xf32> -> vector<12x16xf32>
    %11 = arith.truncf %10 : vector<12x16xf32> to vector<12x16xbf16>
    %c0_10 = arith.constant 0 : index
    %c0_11 = arith.constant 0 : index
    %12 = vector.load %arg5[%c0_10, %c0_11] : memref<8x12xbf16, #tpu.memory_space<vmem>>, vector<8x12xbf16>
    %cst = arith.constant dense<0.000000e+00> : vector<8x16xf32>
    %13 = tpu.matmul %12, %11, %cst {dimension_numbers = #tpu.dot_dimension_numbers<[1], [0], [0], [1], [0, 0, 1, 1], [], []>} : vector<8x12xbf16>, vector<12x16xbf16>, vector<8x16xf32> -> vector<8x16xf32>
    %c0_12 = arith.constant 0 : index
    %c0_13 = arith.constant 0 : index
    %14 = vector.load %arg6[%c0_12, %c0_13] : memref<8x1xf32, #tpu.memory_space<vmem>>, vector<8x1xf32>
    %15 = vector.broadcast %14 : vector<8x1xf32> to vector<8x16xf32>
    %16 = arith.addf %13, %15 : vector<8x16xf32>
    %cst_14 = arith.constant 0.000000e+00 : f32
    %17 = vector.broadcast %cst_14 : f32 to vector<8x16xf32>
    %18 = arith.cmpf ogt, %16, %17 : vector<8x16xf32>
    %cst_15 = arith.constant 2.000000e-01 : f32
    %19 = vector.broadcast %cst_15 : f32 to vector<8x16xf32>
    %20 = arith.mulf %19, %16 : vector<8x16xf32>
    %21 = arith.select %18, %16, %20 : vector<8x16xi1>, vector<8x16xf32>
    %c0_16 = arith.constant 0 : index
    %c0_17 = arith.constant 0 : index
    %22 = vector.load %arg7[%c0_16, %c0_17] : memref<16x8xf32, #tpu.memory_space<vmem>>, vector<16x8xf32>
    %cst_18 = arith.constant dense<0.000000e+00> : vector<8x8xf32>
    %23 = tpu.matmul %21, %22, %cst_18 {dimension_numbers = #tpu.dot_dimension_numbers<[1], [0], [0], [1], [0, 0, 1, 1], [], []>} : vector<8x16xf32>, vector<16x8xf32>, vector<8x8xf32> -> vector<8x8xf32>
    %c0_19 = arith.constant 0 : index
    %c0_20 = arith.constant 0 : index
    %c0_21 = arith.constant 0 : index
    %24 = vector.load %arg8[%c0_19, %c0_20, %c0_21] : memref<1x8x8xf32, #tpu.memory_space<vmem>>, vector<1x8x8xf32>
    %25 = vector.shape_cast %24 : vector<1x8x8xf32> to vector<8x8xf32>
    %26 = vector.shape_cast %23 : vector<8x8xf32> to vector<1x8x8xf32>
    tpu.vector_store %arg8[%c0_19, %c0_20, %c0_21], %26 {strides = array<i32>} : memref<1x8x8xf32, #tpu.memory_space<vmem>>, vector<1x8x8xf32>,
    return
  }
  func.func @transform_0(%arg0: i32, %arg1: i32) -> (i32, i32, i32) {
    %c0_i32 = arith.constant 0 : i32
    %c0_i32_0 = arith.constant 0 : i32
    return %arg0, %c0_i32, %arg1 : i32, i32, i32
  }
  func.func @transform_1(%arg0: i32, %arg1: i32) -> (i32, i32, i32, i32) {
    %c0_i32 = arith.constant 0 : i32
    %c0_i32_0 = arith.constant 0 : i32
    %c0_i32_1 = arith.constant 0 : i32
    return %arg0, %arg1, %c0_i32, %c0_i32_0 : i32, i32, i32, i32
  }
  func.func @transform_2(%arg0: i32, %arg1: i32) -> (i32, i32, i32, i32) {
    %c0_i32 = arith.constant 0 : i32
    %c0_i32_0 = arith.constant 0 : i32
    %c0_i32_1 = arith.constant 0 : i32
    return %arg0, %arg1, %c0_i32, %c0_i32_0 : i32, i32, i32, i32
  }
  func.func @transform_3(%arg0: i32, %arg1: i32) -> (i32, i32) {
    %c0_i32 = arith.constant 0 : i32
    %c0_i32_0 = arith.constant 0 : i32
    %c0_i32_1 = arith.constant 0 : i32
    return %c0_i32, %c0_i32_0 : i32, i32
  }
  func.func @transform_4(%arg0: i32, %arg1: i32) -> (i32, i32) {
    %c0_i32 = arith.constant 0 : i32
    %c0_i32_0 = arith.constant 0 : i32
    %c0_i32_1 = arith.constant 0 : i32
    return %c0_i32, %c0_i32_0 : i32, i32
  }
  func.func @transform_5(%arg0: i32, %arg1: i32) -> (i32, i32) {
    %c0_i32 = arith.constant 0 : i32
    %c0_i32_0 = arith.constant 0 : i32
    %c0_i32_1 = arith.constant 0 : i32
    return %c0_i32, %c0_i32_0 : i32, i32
  }
  func.func @transform_6(%arg0: i32, %arg1: i32) -> (i32, i32, i32) {
    %c0_i32 = arith.constant 0 : i32
    %c0_i32_0 = arith.constant 0 : i32
    return %arg0, %c0_i32, %arg1 : i32, i32, i32
  }
}

</mosaic_0001>

<bundles_post_ra>
// kernel: down_forward.1
= control target key start
LH: loop header
LB: loop body
LE: loop exit
PB: predicated region body
PF: predicated region fallthrough
CT: control target
= control target key end

     0   :  { %11 = vsyncpa [#allocation3], 0  ;;  %s957_s0 = inlined_call_operand.vmem [shape: f32[2,4,16], index: 0, kind: input, shape index: {}]   ;;  %s958_s1 = inlined_call_operand.vmem [shape: f32[2,1,4,1], index: 1, kind: input, shape index: {}, may-alias: {1,2}]   ;;  %s959_s2 = inlined_call_operand.vmem [shape: f32[2,1,4,1], index: 2, kind: input, shape index: {}, may-alias: {1,2}]   ;;  %s960_s3 = inlined_call_operand.vmem [shape: bf16[8,12], index: 3, kind: input, shape index: {}]   ;;  %s961_s4 = inlined_call_operand.vmem [shape: f32[8,1], index: 4, kind: input, shape index: {}]   ;;  %s962_s5 = inlined_call_operand.vmem [shape: f32[16,8], index: 5, kind: input, shape index: {}]   ;;  %s963_s6 = inlined_call_operand.hbm [shape: f32[2,8,8], index: 6, kind: output, shape index: {}]  }
   0x1   :  { %13 = vsyncpa [#allocation3 + $0x1], 0  ;;  %s827_s21 = smov 0   ;;  %s829_s22 = smov 0  }
   0x2   :  { %s831_s23 = smov 0   ;;  %s833_s24 = smov 0  }
   0x3   :  { %s835_s25 = smov 0   ;;  %s837_s26 = smov 0  }
   0x4 LB: > { %s604_s27 = sadd.s32 4294967295, %s782_s26   ;;  %s605_s28 = sadd.s32 4294967294, %s782_s26   ;;  %s782_s26 = sphi %s837_s26, %s19_s26   ;;  %s778_s25 = sphi %s835_s25, %s970_s25   ;;  %s774_s24 = sphi %s833_s24, %s969_s24   ;;  %s770_s23 = sphi %s831_s23, %s968_s23   ;;  %s766_s22 = sphi %s829_s22, %s967_s22   ;;  %s762_s21 = sphi %s827_s21, %s966_s21  }
   0x5   : > { %s31_s29 = sadd.s32 1, %s778_s25  ;;  %s187_s30 = sadd.s32 1, %s770_s23 }
   0x6   : > { %p33_p0 = scmp.ge.s32.totalorder %s31_s29, 2  ;;  %p197_p1 = scmp.ne.s32.totalorder %s770_s23, %s766_s22 }
   0x7   : > { %p198_p2 = scmp.eq.s32.totalorder %s604_s27, 1  ;;  %p203_p3 = scmp.ne.s32.totalorder %s766_s22, %s762_s21 }
   0x8   : > { %s972_s29 = smov (%p33_p0, %s31_s29), 0  ;;  %p204_p5 = scmp.eq.s32.totalorder %s605_s28, 1 }
   0x9   : > { %p867_p4 = por %p198_p2, %p197_p1  ;;  %s182_s8 = ssub.s32 %s778_s25, %s972_s29 }
   0xa   : > { %p608_p6 = scmp.ge.s32.totalorder %s782_s26, 1  ;;  %p185_p7 = scmp.eq.s32.totalorder %s182_s8, 0 }
   0xb   : > { %p874_p8 = por %p204_p5, %p203_p3  ;;  %p261_p9 = scmp.lt.s32.totalorder %s782_s26, 3 }
   0xc   : > { %s880_s10 = scalar_select %p185_p7, %s770_s23, %s187_s30  }
   0xd   : > { %p262_p10 = pnand %p608_p6, %p261_p9 }
   0xe   : > { %p307_p11 = scmp.lt.s32.totalorder (!%p262_p10), %s774_s24, 1  ;;  %v784_v0 = vmov (!%p262_p10), 0.0   ;;  %vm785_vm0 = vmmov (!%p262_p10), 0   ;;  %v786_v3 = vmov (!%p262_p10), 0   ;;  %s787_s19 = smov (!%p262_p10), 1   ;;  %v353_v4 = vld [vmem:[%s961_s4] sm:$0xff] (!%p262_p10) }
   0xf   : > { %265 = sbr.rel (%p262_p10) target bundleno = 596 (0x254), region = 44  ;;  %624 = vmatprep.subr.bf16.mxu0 (!%p262_p10), %v784_v0  ;;  %626 = vmatprep.mubr.msk.bf16.mxu0 (!%p262_p10), %vm785_vm0, %v784_v0  ;;  %s788_s20 = smov (!%p262_p10), 15   ;;  %vm336_vm1 = vcmask (!%p262_p10), 7168   ;;  %vm349_vm2 = vcmask (!%p262_p10), 1043456   ;;  %vm345_vm3 = vcmask (!%p262_p10), 121856   ;;  %vm363_vm4 = vcmask (!%p262_p10), 1045504  }
  0x10   : > { %634 = vmatprep.mubr.msk.f32.mxu1 (!%p262_p10), %vm785_vm0, %v784_v0  ;;  %702 = vset.pattern.permute.xlu1 (!%p262_p10), %v786_v3  ;;  %s789_s30 = smov (!%p262_p10), 127   ;;  %v352_v15 = vld [vmem:[%s960_s3] sm:$0xf] (!%p262_p10)  ;;  %vm359_vm5 = vcmask (!%p262_p10), 97280   ;;  %v411_v17 = vld [vmem:[%s962_s5 + $0x8] sm:$0xff] (!%p262_p10)  ;;  %v790_v19 = vmov (!%p262_p10), 0.0|0.0  }
  0x11   : > { %703 = vset.pattern.permute.xlu0 (!%p262_p10), %v786_v3  ;;  %v410_v16 = vld [vmem:[%s962_s5] sm:$0xff] (!%p262_p10)  ;;  %637 = vmatprep.subr.bf16.mxu1 (!%p262_p10), %v790_v19  ;;  %vm412_vm7 = vcmask (!%p262_p10), 130048   ;;  %s616_s27 = sshll.u32 (!%p262_p10), %s774_s24, 7  ;;  %vm486_vm8 = vcmask (!%p262_p10), 64512  }
  0x12   : > { %v638_v18 = vpack.c.bf16 (!%p262_p10), %v411_v17, %v410_v16 }
  0x14   : > { %639 = vmatpush3.bf16.msra.mxu1 (!%p262_p10), %v638_v18 }
  0x16   : > { %s308_s11 = scalar_select %p307_p11, %s774_s24, 1 }
  0x17   : > { %s791_s24 = smov [#allocation2]  }
  0x18   : > { %s610_s12 = sshll.u32 %s308_s11, 2 }
  0x19   : > { %s313_s15 = scalar_lea.vmem %s957_s0, %s610_s12  ;;  %s327_s18 = scalar_lea.vmem %s959_s2, %s610_s12 }
  0x1a   : > { %v329_v1 = vld [vmem:[%s313_s15] sm:$0xf]  ;;  %s320_s13 = scalar_lea.vmem %s958_s1, %s610_s12  ;;  %s708_s12 = sshll.u32 %s791_s24, 4  ;;  %s709_s12 = int_to_ptr.vmem [resolvable:$false] %s708_s12 }
  0x1b   : > { %v331_v2 = vld [vmem:[%s327_s18] sm:$0xf]  ;;  %333 = vrot.lane.b32.xlu0 %v329_v1, %s787_s19  ;;  %v347_v5 = vrot.slane %v329_v1, 4  ;;  %s304_s19 = sand.u32 1, %s766_s22   ;;  %s710_s16 = scalar_lea.vmem %s709_s12, 256 }
  0x1c   : > { %342 = vrot.lane.b32.xlu1 %v331_v2, %s788_s20  ;;  %v330_v6 = vld [vmem:[%s320_s13] sm:$0xf]  ;;  %s609_s20 = sshll.u32 %s304_s19, 3  ;;  %s910_s13 = scalar_lea.hbm %s963_s6, %s616_s27 }
  0x1d   : > { %s306_s28 = scalar_lea.vmem [#allocation2], %s609_s20  ;;  %s489_s14 = scalar_lea.sflag [#allocation3], %s304_s19 }
  0x1f   : > { %338 = vrot.lane.b32.xlu0 %v329_v1, %s789_s30  ;;  %s503_s30 = sshll.u32 %s306_s28, 4  ;;  %s912_s30 = int_to_ptr.vmem [resolvable:$true] %s503_s30 }
  0x20   : > { %356 = vperm.xlu1 %702, %v353_v4   ;;  %s704_s15 = scalar_lea.vmem %s912_s30, 128  ;;  %p711_p1 = scmp.lt.s32.totalorder %s912_s30, %s709_s12 }
  0x21   : > { %p705_p12 = scmp.ne.s32.totalorder %s912_s30, %s704_s15  ;;  %p712_p2 = scmp.lt.s32.totalorder %s710_s16, %s704_s15 }
  0x23   : > { %p706_p13 = pnand %p705_p12, %p867_p4  ;;  %p713_p3 = por %p712_p2, %p711_p1 }
  0x25   : > { %p707_p0 = pneg %p706_p13 }
  0x27   : > { %p714_p5 = pnand %p713_p3, %p707_p0 }
  0x8d   : > { %v334_v7 = vpop.permute.xlu0 %333 }
  0x8e   : > { %v337_v8 = vsel %vm336_vm1, %v330_v6, %v334_v7  ;;  %v343_v9 = vpop.permute.xlu1 %342 }
  0x8f   : > { %v350_v10 = vsel %vm349_vm2, %v337_v8, %v347_v5 }
  0x91   : > { %v339_v11 = vpop.permute.xlu0 %338 }
  0x92   : > { %v346_v12 = vsel %vm345_vm3, %v339_v11, %v343_v9 }
  0x93   : > { %v351_v13 = vpack.c.bf16 %v346_v12, %v350_v10 }
  0x95   : > { %v365_v14 = vsel %vm363_vm4, %v351_v13, 0 }
  0x96   : > { %625 = vmatpush3.bf16.msra.mxu0 %v365_v14 }
  0x99   : > { %627 = vmatmul.mubr.msk.bf16.vlgmr.msra.gmra.mrb[0].mxu0 %vm359_vm5, %v352_v15 }
  0x9f   : > { %v357_v20 = vpop.permute.xlu1 %356 }
 0x16c   : > { %v401_v21 = vpop.f32.mrb[0].mxu0 }
 0x16d   : > { %v402_v22 = vadd.f32 %v401_v21, %v357_v20  ;;  %v628_v23 = vpop.f32.mrb[1].mxu0 }
 0x16e   : > { %v404_v24 = vpop.f32.mrb[2].mxu0 }
 0x16f   : > { %vm407_vm6 = vcmp.gt.f32.partialorder %v402_v22, 0.0  ;;  %v408_v25 = vmul.f32 0.2, %v402_v22  ;;  %v629_v26 = vpop.f32.mrb[3].mxu0 }
 0x171   : > { %v409_v27 = vsel %vm407_vm6, %v402_v22, %v408_v25 }
 0x172   : > { %635 = vmatmul.mubr.msk.f32.vlgmr.msra.gmra.mrb[0].mxu1 %vm412_vm7, %v409_v27 }
 0x245   : > { %v482_v28 = vpop.f32.mrb[0].mxu1 }
 0x246   : > { %487 = vst.msk [vmem:[%s306_s28] sm:$0xff] %vm486_vm8, %v482_v28  ;;  %v636_v29 = vpop.f32.mrb[1].mxu1 }
 0x247   : > { %717 = shalt.err (!%p714_p5)
}
 0x248   : > { %s718_s17 = scalar_lea.hbm %s910_s13, 128  ;;  %s722_s20 = scalar_lea.hbm %s963_s6, 256 }
 0x249   : > { %p719_p6 = scmp.ne.s32.totalorder %s910_s13, %s718_s17  ;;  %p723_p10 = scmp.lt.u32.totalorder %s910_s13, %s963_s6 }
 0x24a   : > { %p724_p11 = scmp.lt.u32.totalorder %s722_s20, %s718_s17  ;;  %p726_p13 = scmp.lt.u32.totalorder %s718_s17, %s910_s13 }
 0x24b   : > { %p720_p7 = pnand %p719_p6, %p867_p4 }
 0x24c   : > { %p725_p12 = por %p724_p11, %p723_p10 }
 0x24d   : > { %p721_p9 = pneg %p720_p7 }
 0x24e   : > { %p727_p0 = por %p726_p13, %p725_p12 }
 0x250   : > { %p728_p1 = pnand %p727_p0, %p721_p9 }
 0x252   : > { %731 = shalt.err (!%p728_p1)
}
 0x253   : > { %640 = dma.vmem_to_hbm [thread:$0]  (%p867_p4), %s912_s30, 128, %s910_s13, %s489_s14  }
 0x254 PF: > { %p646_p2 = scmp.ge.s32.totalorder %s782_s26, 2  ;;  %s515_s8 = sand.u32 1, %s762_s21  }
 0x255   : > { %s516_s11 = scalar_lea.sflag [#allocation3], %s515_s8 }
 0x256   : > { %p643_p3 = pnand %p646_p2, %p874_p8 }
 0x258   : > { %757 = dma.done.wait (!%p643_p3), %s516_s11, 128  }
 0x259   : > { %759 = vsyncadd (!%p643_p3), %s516_s11, 4294967168  ;;  %s19_s26 = sadd.s32 1, %s782_s26   ;;  %s966_s21 = smov %s766_s22 }
 0x25a   : > { %p16_p5 = scmp.ge.s32.totalorder %s19_s26, 4   ;;  %s967_s22 = smov %s770_s23 }
 0x25b   : > { %s968_s23 = smov %s880_s10  ;;  %s969_s24 = smov %s778_s25 }
 0x25c   : > { %s970_s25 = smov %s972_s29  ;;  %18 = sbr.rel (!%p16_p5) target bundleno = 4 (0x4), region = 85 }
 0x263   :  { %521 = vsyncpa [#allocation3], 1 }
 0x264   :  { %523 = vsyncpa [#allocation3 + $0x1], 1 }

</bundles_post_ra>
